<compile_context>
chip_gen: v6e
topology: v6e:2x2x1
jax: 0.10.0
libtpu: 0.0.40
codegen_flags: <defaults>
</compile_context>

<pallas_src>
import functools

import jax
import jax.numpy as jnp
from jax.experimental import pallas as pl
from jax.experimental.pallas import tpu as pltpu


# ---------------------------------------------------------------------------
# Fused Pallas kernel: all GCN layers + readout for one batch block
# ---------------------------------------------------------------------------
def _make_fused_kernel(*, num_layer, E1, N, b_blk):
    def kernel(L_ref, s_ref, *rest):
        # rest = [W_0, b_0, ..., W_{L-1}, b_{L-1}, W_ro, b_ro, out_ref]
        out_ref = rest[-1]
        wrefs = rest[:-1]

        # bf16 0/1 adjacency -> f32 once per block (exact).
        Lb = L_ref[...].astype(jnp.float32)          # (E1, b_blk, N, N)
        state = s_ref[...].astype(jnp.float32)       # (b_blk, N, D_in)

        # ---- propagation layers (state stays resident, no HBM round trip) ----
        for tt in range(num_layer):
            W = wrefs[2 * tt][...]                   # (E1*D_in, D_out) f32
            b = wrefs[2 * tt + 1][...]               # (1, D_out)
            d_in = state.shape[-1]
            d_out = W.shape[-1]
            # per-edge-type batched bmm: (b_blk,N,N) @ (b_blk,N,D) -> (b_blk,N,D)
            msgs = [
                jax.lax.dot_general(
                    Lb[ii], state,
                    dimension_numbers=(((2,), (1,)), ((0,), (0,))),
                    preferred_element_type=jnp.float32)
                for ii in range(E1)
            ]
            # concat along features == PyTorch cat(dim=2); then ONE matmul with
            # the full (E1*D_in, D_out) weight on a folded 2-D operand.
            msg2d = jnp.concatenate(msgs, axis=-1).reshape(b_blk * N, E1 * d_in)
            state2d = jnp.dot(msg2d, W, preferred_element_type=jnp.float32) + b
            state = jnp.maximum(state2d, 0.0).reshape(b_blk, N, d_out)  # ReLU
            # TODO(synk): F.dropout is identity in eval mode / dropout=0.0.

        # ---- readout: merged (final linear | attention linear) matmul ----
        H = state.shape[-1]
        W_ro = wrefs[2 * num_layer][...]             # (H, P+1)
        b_ro = wrefs[2 * num_layer + 1][...]         # (1, P+1)
        P = W_ro.shape[-1] - 1
        s2d = state.reshape(b_blk * N, H)
        y_all = jnp.dot(s2d, W_ro, preferred_element_type=jnp.float32) + b_ro
        y = y_all[:, :P]                             # (b_blk*N, P)
        att = jax.nn.sigmoid(y_all[:, P:])           # (b_blk*N, 1)
        weighted = (att * y).reshape(b_blk, N, P)
        # TODO(synk): mask=None path only; masked per-graph mean not implemented.
        out_ref[0] = jnp.mean(weighted, axis=1)      # (b_blk, P)

    return kernel


def _pick_batch_block(B, N, target_rows=128):
    """Largest divisor of B so that B_blk*N ~ target_rows, keeping >=2 grid steps."""
    divisors = [d for d in range(1, B + 1) if B % d == 0]
    target = max(1, target_rows // max(N, 1))
    cands = [d for d in divisors if d <= target] or [1]
    blk = max(cands)
    if B // blk < 2:  # v7x has 2 TensorCores; prefer an even-ish multi-step grid
        smaller = [d for d in cands if B // d >= 2]
        if smaller:
            blk = max(smaller)
    return blk


def gcnfp_fused(L_t, state0, filters, W_ro, b_ro, *, b_blk=None):
    """L_t: (E1, B, N, N) bf16 binarized; state0: (B, N, D_in) f32."""
    E1, B, N, _ = L_t.shape
    D_in = state0.shape[-1]
    num_layer = len(filters)
    P = W_ro.shape[-1] - 1

    if b_blk is None:
        b_blk = _pick_batch_block(B, N)
    assert B % b_blk == 0
    num_blocks = B // b_blk

    kernel = _make_fused_kernel(num_layer=num_layer, E1=E1, N=N, b_blk=b_blk)

    weight_args = []
    weight_specs = []
    for (W, b) in filters:
        weight_args += [W, b]
        weight_specs += [
            pl.BlockSpec(W.shape, lambda bb: (0, 0)),
            pl.BlockSpec(b.shape, lambda bb: (0, 0)),
        ]
    weight_args += [W_ro, b_ro]
    weight_specs += [
        pl.BlockSpec(W_ro.shape, lambda bb: (0, 0)),
        pl.BlockSpec(b_ro.shape, lambda bb: (0, 0)),
    ]

    out = pl.pallas_call(
        kernel,
        out_shape=jax.ShapeDtypeStruct((num_blocks, b_blk, P), jnp.float32),
        grid=(num_blocks,),
        in_specs=[
            pl.BlockSpec((E1, b_blk, N, N), lambda bb: (0, bb, 0, 0)),
            pl.BlockSpec((b_blk, N, D_in), lambda bb: (bb, 0, 0)),
        ] + weight_specs,
        out_specs=pl.BlockSpec((1, b_blk, P), lambda bb: (bb, 0, 0)),
        compiler_params=pltpu.CompilerParams(
            dimension_semantics=("parallel",),
            # Stay comfortably under v7x's 64 MiB physical VMEM.
            vmem_limit_bytes=48 * 1024 * 1024,
        ),
    )(L_t, state0, *weight_args)
    return out.reshape(B, P)


# ---------------------------------------------------------------------------
# Parameter init (mirrors PyTorch __init__/_init_param shapes)
# ---------------------------------------------------------------------------
def xavier_uniform(key, shape):
    # shape = (out, in) as in nn.Linear.weight
    fan_out, fan_in = shape
    bound = (6.0 / (fan_in + fan_out)) ** 0.5
    return jax.random.uniform(key, shape, jnp.float32, -bound, bound)


def init_params(key, input_dim, hidden_dim, output_dim, num_layer, num_atom, num_edgetype):
    dim_list = [input_dim] + list(hidden_dim) + [output_dim]
    E1 = num_edgetype + 1
    keys = jax.random.split(key, num_layer + 3)
    params = {}
    # embedding ~ N(0, 1) (PyTorch default)
    params["embedding"] = jax.random.normal(keys[0], (num_atom, input_dim), jnp.float32)
    # propagation filters: Linear(dim_list[tt] * (E+1), dim_list[tt+1])
    params["filters"] = []
    for tt in range(num_layer):
        D_in, D_out = dim_list[tt], dim_list[tt + 1]
        W = xavier_uniform(keys[1 + tt], (D_out, D_in * E1))   # (out, in)
        params["filters"].append((W.T, jnp.zeros((1, D_out), jnp.float32)))  # (E1*D_in, D_out)
    # final filter: Linear(dim_list[-2], dim_list[-1])
    W_out = xavier_uniform(keys[num_layer + 1], (dim_list[-1], dim_list[-2]))
    params["W_out"] = W_out.T                                  # (H, P)
    params["b_out"] = jnp.zeros((1, dim_list[-1]), jnp.float32)
    # attention: Linear(dim_list[-2], 1) + Sigmoid
    w_att = xavier_uniform(keys[num_layer + 2], (1, dim_list[-2]))
    params["w_att"] = w_att.T                                  # (H, 1)
    params["b_att"] = jnp.zeros((1, 1), jnp.float32)
    return params


# ---------------------------------------------------------------------------
# Forward pass (eval mode: dropout identity, mask=None, no label/loss)
# ---------------------------------------------------------------------------
def gcnfp_forward(params, node_feat, L):
    """node_feat: (B, N) int32, L: (B, N, N, E+1) float32 -> score (B, P)."""
    # glue: embedding gather
    state0 = params["embedding"][node_feat].astype(jnp.float32)        # (B, N, D_in)
    # binarize ONCE in f32 (L[L != 0] = 1.0), then downcast to bf16 (0/1 exact)
    Lb = jnp.where(L != 0.0, 1.0, 0.0)
    L_t = jnp.transpose(Lb, (3, 0, 1, 2)).astype(jnp.bfloat16)          # (E1, B, N, N)
    # merge the final linear and the attention linear into one (H, P+1) weight
    W_ro = jnp.concatenate([params["W_out"], params["w_att"]], axis=1)  # (H, P+1)
    b_ro = jnp.concatenate([params["b_out"], params["b_att"]], axis=1)  # (1, P+1)
    return gcnfp_fused(L_t, state0, params["filters"], W_ro, b_ro)


def gcnfp_reference(params, node_feat, L):
    """Pure-JAX reference for correctness checking."""
    Lb = jnp.where(L != 0.0, 1.0, 0.0).astype(jnp.float32)              # (B, N, N, E1)
    state = params["embedding"][node_feat].astype(jnp.float32)
    E1 = Lb.shape[-1]
    for (W, b) in params["filters"]:
        msgs = [jnp.einsum("bnm,bmd->bnd", Lb[..., ii], state) for ii in range(E1)]
        msg = jnp.concatenate(msgs, axis=2)                             # (B, N, E1*D)
        state = jax.nn.relu(msg @ W + b)
    y = state @ params["W_out"] + params["b_out"]                       # (B, N, P)
    att = jax.nn.sigmoid(state @ params["w_att"] + params["b_att"])     # (B, N, 1)
    return jnp.mean(att * y, axis=1)                                    # (B, P)


if __name__ == "__main__":
    # small config consistent with the module
    B, N = 8, 16                  # batch, max nodes (B blocked 2 x 4 inside the kernel)
    input_dim = 8
    hidden_dim = [32, 32]
    output_dim = 4                # P
    num_layer = len(hidden_dim)
    num_atom = 10
    num_edgetype = 2              # E, so E+1 = 3 adjacency slices

    key = jax.random.PRNGKey(0)
    k_param, k_feat, k_adj = jax.random.split(key, 3)

    params = init_params(k_param, input_dim, hidden_dim, output_dim,
                         num_layer, num_atom, num_edgetype)

    node_feat = jax.random.randint(k_feat, (B, N), 0, num_atom, dtype=jnp.int32)
    # sparse-ish adjacency with arbitrary nonzero values (forward binarizes it)
    raw = jax.random.uniform(k_adj, (B, N, N, num_edgetype + 1), jnp.float32)
    L = jnp.where(raw > 0.7, raw, 0.0)

    score = gcnfp_forward(params, node_feat, L)
    score = jax.block_until_ready(score)

    ref = gcnfp_reference(params, node_feat, L)
    assert score.shape == (B, output_dim)
    assert jnp.allclose(score, ref, atol=1e-4, rtol=1e-4), (score, ref)

    print("KERNEL_OK")
</pallas_src>

<mosaic_0001>
module attributes {stable_mosaic.version = 11 : i64} {
  func.func @kernel(%arg0: i32, %arg1: memref<3x4x16x16xbf16, #tpu.memory_space<vmem>>, %arg2: memref<4x16x8xf32, #tpu.memory_space<vmem>>, %arg3: memref<24x32xf32, #tpu.memory_space<vmem>>, %arg4: memref<1x32xf32, #tpu.memory_space<vmem>>, %arg5: memref<96x32xf32, #tpu.memory_space<vmem>>, %arg6: memref<1x32xf32, #tpu.memory_space<vmem>>, %arg7: memref<32x5xf32, #tpu.memory_space<vmem>>, %arg8: memref<1x5xf32, #tpu.memory_space<vmem>>, %arg9: memref<1x4x4xf32, #tpu.memory_space<vmem>>) attributes {dimension_semantics = [#tpu.dimension_semantics<parallel>], iteration_bounds = array<i64: 2>, scalar_prefetch = 0 : i64, scratch_operands = 0 : i64, tpu.core_type = #tpu.core_type<tc>, window_params = [{transform_indices = @transform_0, window_bounds = array<i64: 3, 4, 16, 16>}, {transform_indices = @transform_1, window_bounds = array<i64: 4, 16, 8>}, {pipeline_mode = #tpu.pipeline_mode<synchronous>, transform_indices = @transform_2, window_bounds = array<i64: 24, 32>}, {pipeline_mode = #tpu.pipeline_mode<synchronous>, transform_indices = @transform_3, window_bounds = array<i64: 1, 32>}, {pipeline_mode = #tpu.pipeline_mode<synchronous>, transform_indices = @transform_4, window_bounds = array<i64: 96, 32>}, {pipeline_mode = #tpu.pipeline_mode<synchronous>, transform_indices = @transform_5, window_bounds = array<i64: 1, 32>}, {pipeline_mode = #tpu.pipeline_mode<synchronous>, transform_indices = @transform_6, window_bounds = array<i64: 32, 5>}, {pipeline_mode = #tpu.pipeline_mode<synchronous>, transform_indices = @transform_7, window_bounds = array<i64: 1, 5>}, {transform_indices = @transform_8, window_bounds = array<i64: 1, 4, 4>}]} {
    %c0 = arith.constant 0 : index
    %c0_0 = arith.constant 0 : index
    %c0_1 = arith.constant 0 : index
    %c0_2 = arith.constant 0 : index
    %0 = vector.load %arg1[%c0, %c0_0, %c0_1, %c0_2] : memref<3x4x16x16xbf16, #tpu.memory_space<vmem>>, vector<3x4x16x16xbf16>
    %1 = arith.extf %0 : vector<3x4x16x16xbf16> to vector<3x4x16x16xf32>
    %c0_3 = arith.constant 0 : index
    %c0_4 = arith.constant 0 : index
    %c0_5 = arith.constant 0 : index
    %2 = vector.load %arg2[%c0_3, %c0_4, %c0_5] : memref<4x16x8xf32, #tpu.memory_space<vmem>>, vector<4x16x8xf32>
    %c0_6 = arith.constant 0 : index
    %c0_7 = arith.constant 0 : index
    %3 = vector.load %arg3[%c0_6, %c0_7] : memref<24x32xf32, #tpu.memory_space<vmem>>, vector<24x32xf32>
    %c0_8 = arith.constant 0 : index
    %c0_9 = arith.constant 0 : index
    %4 = vector.load %arg4[%c0_8, %c0_9] : memref<1x32xf32, #tpu.memory_space<vmem>>, vector<1x32xf32>
    %5 = vector.extract_strided_slice %1 {offsets = [0, 0, 0, 0], sizes = [1, 4, 16, 16], strides = [1, 1, 1, 1]} : vector<3x4x16x16xf32> to vector<1x4x16x16xf32>
    %6 = vector.shape_cast %5 : vector<1x4x16x16xf32> to vector<4x16x16xf32>
    %cst = arith.constant dense<0.000000e+00> : vector<4x16x8xf32>
    %7 = tpu.matmul %6, %2, %cst {dimension_numbers = #tpu.dot_dimension_numbers<[2], [1], [1], [2], [0, 0, 0, 1, 1, 2], [0], [0]>} : vector<4x16x16xf32>, vector<4x16x8xf32>, vector<4x16x8xf32> -> vector<4x16x8xf32>
    %8 = vector.extract_strided_slice %1 {offsets = [1, 0, 0, 0], sizes = [1, 4, 16, 16], strides = [1, 1, 1, 1]} : vector<3x4x16x16xf32> to vector<1x4x16x16xf32>
    %9 = vector.shape_cast %8 : vector<1x4x16x16xf32> to vector<4x16x16xf32>
    %cst_10 = arith.constant dense<0.000000e+00> : vector<4x16x8xf32>
    %10 = tpu.matmul %9, %2, %cst_10 {dimension_numbers = #tpu.dot_dimension_numbers<[2], [1], [1], [2], [0, 0, 0, 1, 1, 2], [0], [0]>} : vector<4x16x16xf32>, vector<4x16x8xf32>, vector<4x16x8xf32> -> vector<4x16x8xf32>
    %11 = vector.extract_strided_slice %1 {offsets = [2, 0, 0, 0], sizes = [1, 4, 16, 16], strides = [1, 1, 1, 1]} : vector<3x4x16x16xf32> to vector<1x4x16x16xf32>
    %12 = vector.shape_cast %11 : vector<1x4x16x16xf32> to vector<4x16x16xf32>
    %cst_11 = arith.constant dense<0.000000e+00> : vector<4x16x8xf32>
    %13 = tpu.matmul %12, %2, %cst_11 {dimension_numbers = #tpu.dot_dimension_numbers<[2], [1], [1], [2], [0, 0, 0, 1, 1, 2], [0], [0]>} : vector<4x16x16xf32>, vector<4x16x8xf32>, vector<4x16x8xf32> -> vector<4x16x8xf32>
    %14 = tpu.concatenate %7, %10, %13 in 2 : vector<4x16x8xf32>, vector<4x16x8xf32>, vector<4x16x8xf32> -> vector<4x16x24xf32>
    %15 = vector.shape_cast %14 : vector<4x16x24xf32> to vector<64x24xf32>
    %cst_12 = arith.constant dense<0.000000e+00> : vector<64x32xf32>
    %16 = tpu.matmul %15, %3, %cst_12 {dimension_numbers = #tpu.dot_dimension_numbers<[1], [0], [0], [1], [0, 0, 1, 1], [], []>} : vector<64x24xf32>, vector<24x32xf32>, vector<64x32xf32> -> vector<64x32xf32>
    %17 = vector.broadcast %4 : vector<1x32xf32> to vector<64x32xf32>
    %18 = arith.addf %16, %17 : vector<64x32xf32>
    %cst_13 = arith.constant 0.000000e+00 : f32
    %19 = vector.broadcast %cst_13 : f32 to vector<64x32xf32>
    %20 = arith.maximumf %18, %19 : vector<64x32xf32>
    %21 = vector.shape_cast %20 : vector<64x32xf32> to vector<4x16x32xf32>
    %c0_14 = arith.constant 0 : index
    %c0_15 = arith.constant 0 : index
    %22 = vector.load %arg5[%c0_14, %c0_15] : memref<96x32xf32, #tpu.memory_space<vmem>>, vector<96x32xf32>
    %c0_16 = arith.constant 0 : index
    %c0_17 = arith.constant 0 : index
    %23 = vector.load %arg6[%c0_16, %c0_17] : memref<1x32xf32, #tpu.memory_space<vmem>>, vector<1x32xf32>
    %24 = vector.extract_strided_slice %1 {offsets = [0, 0, 0, 0], sizes = [1, 4, 16, 16], strides = [1, 1, 1, 1]} : vector<3x4x16x16xf32> to vector<1x4x16x16xf32>
    %25 = vector.shape_cast %24 : vector<1x4x16x16xf32> to vector<4x16x16xf32>
    %cst_18 = arith.constant dense<0.000000e+00> : vector<4x16x32xf32>
    %26 = tpu.matmul %25, %21, %cst_18 {dimension_numbers = #tpu.dot_dimension_numbers<[2], [1], [1], [2], [0, 0, 0, 1, 1, 2], [0], [0]>} : vector<4x16x16xf32>, vector<4x16x32xf32>, vector<4x16x32xf32> -> vector<4x16x32xf32>
    %27 = vector.extract_strided_slice %1 {offsets = [1, 0, 0, 0], sizes = [1, 4, 16, 16], strides = [1, 1, 1, 1]} : vector<3x4x16x16xf32> to vector<1x4x16x16xf32>
    %28 = vector.shape_cast %27 : vector<1x4x16x16xf32> to vector<4x16x16xf32>
    %cst_19 = arith.constant dense<0.000000e+00> : vector<4x16x32xf32>
    %29 = tpu.matmul %28, %21, %cst_19 {dimension_numbers = #tpu.dot_dimension_numbers<[2], [1], [1], [2], [0, 0, 0, 1, 1, 2], [0], [0]>} : vector<4x16x16xf32>, vector<4x16x32xf32>, vector<4x16x32xf32> -> vector<4x16x32xf32>
    %30 = vector.extract_strided_slice %1 {offsets = [2, 0, 0, 0], sizes = [1, 4, 16, 16], strides = [1, 1, 1, 1]} : vector<3x4x16x16xf32> to vector<1x4x16x16xf32>
    %31 = vector.shape_cast %30 : vector<1x4x16x16xf32> to vector<4x16x16xf32>
    %cst_20 = arith.constant dense<0.000000e+00> : vector<4x16x32xf32>
    %32 = tpu.matmul %31, %21, %cst_20 {dimension_numbers = #tpu.dot_dimension_numbers<[2], [1], [1], [2], [0, 0, 0, 1, 1, 2], [0], [0]>} : vector<4x16x16xf32>, vector<4x16x32xf32>, vector<4x16x32xf32> -> vector<4x16x32xf32>
    %33 = tpu.concatenate %26, %29, %32 in 2 : vector<4x16x32xf32>, vector<4x16x32xf32>, vector<4x16x32xf32> -> vector<4x16x96xf32>
    %34 = vector.shape_cast %33 : vector<4x16x96xf32> to vector<64x96xf32>
    %cst_21 = arith.constant dense<0.000000e+00> : vector<64x32xf32>
    %35 = tpu.matmul %34, %22, %cst_21 {dimension_numbers = #tpu.dot_dimension_numbers<[1], [0], [0], [1], [0, 0, 1, 1], [], []>} : vector<64x96xf32>, vector<96x32xf32>, vector<64x32xf32> -> vector<64x32xf32>
    %36 = vector.broadcast %23 : vector<1x32xf32> to vector<64x32xf32>
    %37 = arith.addf %35, %36 : vector<64x32xf32>
    %cst_22 = arith.constant 0.000000e+00 : f32
    %38 = vector.broadcast %cst_22 : f32 to vector<64x32xf32>
    %39 = arith.maximumf %37, %38 : vector<64x32xf32>
    %40 = vector.shape_cast %39 : vector<64x32xf32> to vector<4x16x32xf32>
    %c0_23 = arith.constant 0 : index
    %c0_24 = arith.constant 0 : index
    %41 = vector.load %arg7[%c0_23, %c0_24] : memref<32x5xf32, #tpu.memory_space<vmem>>, vector<32x5xf32>
    %c0_25 = arith.constant 0 : index
    %c0_26 = arith.constant 0 : index
    %42 = vector.load %arg8[%c0_25, %c0_26] : memref<1x5xf32, #tpu.memory_space<vmem>>, vector<1x5xf32>
    %43 = vector.shape_cast %40 : vector<4x16x32xf32> to vector<64x32xf32>
    %cst_27 = arith.constant dense<0.000000e+00> : vector<64x5xf32>
    %44 = tpu.matmul %43, %41, %cst_27 {dimension_numbers = #tpu.dot_dimension_numbers<[1], [0], [0], [1], [0, 0, 1, 1], [], []>} : vector<64x32xf32>, vector<32x5xf32>, vector<64x5xf32> -> vector<64x5xf32>
    %45 = vector.broadcast %42 : vector<1x5xf32> to vector<64x5xf32>
    %46 = arith.addf %44, %45 : vector<64x5xf32>
    %47 = vector.extract_strided_slice %46 {offsets = [0, 0], sizes = [64, 4], strides = [1, 1]} : vector<64x5xf32> to vector<64x4xf32>
    %48 = vector.extract_strided_slice %46 {offsets = [0, 4], sizes = [64, 1], strides = [1, 1]} : vector<64x5xf32> to vector<64x1xf32>
    %49 = arith.negf %48 : vector<64x1xf32>
    %50 = math.exp %49 : vector<64x1xf32>
    %cst_28 = arith.constant 1.000000e+00 : f32
    %51 = vector.broadcast %cst_28 : f32 to vector<64x1xf32>
    %52 = arith.addf %51, %50 : vector<64x1xf32>
    %53 = arith.divf %51, %52 : vector<64x1xf32>
    %54 = vector.broadcast %53 : vector<64x1xf32> to vector<64x4xf32>
    %55 = arith.mulf %54, %47 : vector<64x4xf32>
    %56 = vector.shape_cast %55 : vector<64x4xf32> to vector<4x16x4xf32>
    %cst_29 = arith.constant dense<0.000000e+00> : vector<4x4xf32>
    %57 = vector.multi_reduction <add>, %56, %cst_29 [1] : vector<4x16x4xf32> to vector<4x4xf32>
    %cst_30 = arith.constant 1.600000e+01 : f32
    %58 = vector.broadcast %cst_30 : f32 to vector<4x4xf32>
    %59 = arith.divf %57, %58 : vector<4x4xf32>
    %c0_31 = arith.constant 0 : index
    %c0_32 = arith.constant 0 : index
    %c0_33 = arith.constant 0 : index
    %60 = vector.load %arg9[%c0_31, %c0_32, %c0_33] : memref<1x4x4xf32, #tpu.memory_space<vmem>>, vector<1x4x4xf32>
    %61 = vector.shape_cast %60 : vector<1x4x4xf32> to vector<4x4xf32>
    %62 = vector.shape_cast %59 : vector<4x4xf32> to vector<1x4x4xf32>
    tpu.vector_store %arg9[%c0_31, %c0_32, %c0_33], %62 {strides = array<i32>} : memref<1x4x4xf32, #tpu.memory_space<vmem>>, vector<1x4x4xf32>,
    return
  }
  func.func @transform_0(%arg0: i32) -> (i32, i32, i32, i32) {
    %c0_i32 = arith.constant 0 : i32
    %c0_i32_0 = arith.constant 0 : i32
    %c0_i32_1 = arith.constant 0 : i32
    %c0_i32_2 = arith.constant 0 : i32
    return %c0_i32, %arg0, %c0_i32_0, %c0_i32_1 : i32, i32, i32, i32
  }
  func.func @transform_1(%arg0: i32) -> (i32, i32, i32) {
    %c0_i32 = arith.constant 0 : i32
    %c0_i32_0 = arith.constant 0 : i32
    %c0_i32_1 = arith.constant 0 : i32
    return %arg0, %c0_i32, %c0_i32_0 : i32, i32, i32
  }
  func.func @transform_2(%arg0: i32) -> (i32, i32) {
    %c0_i32 = arith.constant 0 : i32
    %c0_i32_0 = arith.constant 0 : i32
    %c0_i32_1 = arith.constant 0 : i32
    return %c0_i32, %c0_i32_0 : i32, i32
  }
  func.func @transform_3(%arg0: i32) -> (i32, i32) {
    %c0_i32 = arith.constant 0 : i32
    %c0_i32_0 = arith.constant 0 : i32
    %c0_i32_1 = arith.constant 0 : i32
    return %c0_i32, %c0_i32_0 : i32, i32
  }
  func.func @transform_4(%arg0: i32) -> (i32, i32) {
    %c0_i32 = arith.constant 0 : i32
    %c0_i32_0 = arith.constant 0 : i32
    %c0_i32_1 = arith.constant 0 : i32
    return %c0_i32, %c0_i32_0 : i32, i32
  }
  func.func @transform_5(%arg0: i32) -> (i32, i32) {
    %c0_i32 = arith.constant 0 : i32
    %c0_i32_0 = arith.constant 0 : i32
    %c0_i32_1 = arith.constant 0 : i32
    return %c0_i32, %c0_i32_0 : i32, i32
  }
  func.func @transform_6(%arg0: i32) -> (i32, i32) {
    %c0_i32 = arith.constant 0 : i32
    %c0_i32_0 = arith.constant 0 : i32
    %c0_i32_1 = arith.constant 0 : i32
    return %c0_i32, %c0_i32_0 : i32, i32
  }
  func.func @transform_7(%arg0: i32) -> (i32, i32) {
    %c0_i32 = arith.constant 0 : i32
    %c0_i32_0 = arith.constant 0 : i32
    %c0_i32_1 = arith.constant 0 : i32
    return %c0_i32, %c0_i32_0 : i32, i32
  }
  func.func @transform_8(%arg0: i32) -> (i32, i32, i32) {
    %c0_i32 = arith.constant 0 : i32
    %c0_i32_0 = arith.constant 0 : i32
    %c0_i32_1 = arith.constant 0 : i32
    return %arg0, %c0_i32, %c0_i32_0 : i32, i32, i32
  }
}

</mosaic_0001>

<bundles_post_ra>
// kernel: tpu_custom_call.1
= control target key start
LH: loop header
LB: loop body
LE: loop exit
PB: predicated region body
PF: predicated region fallthrough
CT: control target
= control target key end

     0   :  { %13 = vsyncpa [#allocation4], 0  ;;  %s4592_s0 = inlined_call_operand.vmem [shape: bf16[3,8,16,16], index: 0, kind: input, shape index: {}]   ;;  %s4593_s1 = inlined_call_operand.vmem [shape: f32[8,16,8], index: 1, kind: input, shape index: {}]   ;;  %s4594_s2 = inlined_call_operand.vmem [shape: f32[24,32], index: 2, kind: input, shape index: {}]   ;;  %s4595_s3 = inlined_call_operand.vmem [shape: f32[1,32], index: 3, kind: input, shape index: {}]   ;;  %s4596_s4 = inlined_call_operand.vmem [shape: f32[96,32], index: 4, kind: input, shape index: {}]   ;;  %s4597_s5 = inlined_call_operand.vmem [shape: f32[1,32], index: 5, kind: input, shape index: {}]   ;;  %s4598_s6 = inlined_call_operand.vmem [shape: f32[32,5], index: 6, kind: input, shape index: {}]   ;;  %s4599_s7 = inlined_call_operand.vmem [shape: f32[1,5], index: 7, kind: input, shape index: {}]   ;;  %s4600_s8 = inlined_call_operand.hbm [shape: f32[2,4,4], index: 8, kind: output, shape index: {}]  }
   0x1   :  { %15 = vsyncpa [#allocation4 + $0x1], 0  ;;  %s3980_s27 = smov 0   ;;  %s3982_s28 = smov 0  }
   0x2   :  { %s3984_s29 = smov 0   ;;  %s3986_s30 = smov 0  }
   0x3 LB: > { %s4001_s9 = sadd.s32 4294967295, %s3927_s30   ;;  %s3246_s10 = sadd.s32 4294967294, %s3927_s30   ;;  %s3927_s30 = sphi %s3986_s30, %s4606_s30   ;;  %s3923_s29 = sphi %s3984_s29, %s4605_s29   ;;  %s3919_s28 = sphi %s3982_s28, %s4604_s28   ;;  %s3915_s27 = sphi %s3980_s27, %s4603_s27  }
   0x4   : > { %s4005_s11 = sadd.s32 1, %s3927_s30   ;;  %s28_s12 = sadd.s32 1, %s3923_s29 }
   0x5   : > { %s25_s13 = ssub.s32 %s3927_s30, %s4005_s11  ;;  %p35_p0 = scmp.ne.s32.totalorder %s3923_s29, %s3919_s28 }
   0x6   : > { %p26_p1 = scmp.eq.s32.totalorder %s25_s13, 0  ;;  %p36_p2 = scmp.eq.s32.totalorder %s3927_s30, 0 }
   0x7   : > { %p217_p3 = scmp.eq.s32.totalorder %s4001_s9, 1  ;;  %p222_p4 = scmp.ne.s32.totalorder %s3919_s28, %s3915_s27 }
   0x8   : > { %s4017_s14 = scalar_select %p26_p1, %s3923_s29, %s28_s12  }
   0x9   : > { %p37_p5 = por %p36_p2, %p35_p0  ;;  %p4019_p6 = por %p217_p3, %p35_p0 }
   0xa   : > { %p223_p7 = scmp.eq.s32.totalorder %s3246_s10, 1  ;;  %p3248_p9 = scmp.ge.s32.totalorder %s3927_s30, 2 }
   0xc   : > { %p4023_p8 = por %p223_p7, %p222_p4  ;;  %257 = sbr.rel (%p3248_p9) target bundleno = 28 (0x1c), region = 40 }
  0x11   : > { %260 = sbr.rel (!%p37_p5) target bundleno = 28 (0x1c), region = 44  ;;  %s262_s17 = sand.u32 (%p37_p5), 1, %s3923_s29  }
  0x12   : > { %s3345_s18 = sshll.u32 (%p37_p5), %s3927_s30, 5  ;;  %s3787_s19 = smul.u32 (%p37_p5), 96, %s262_s17 }
  0x13   : > { %s268_s22 = scalar_lea.vmem (%p37_p5), %s4592_s0, %s3345_s18 }
  0x14   : > { %v285_v0 = vld [vmem:[%s268_s22] sm:$0xff] (%p37_p5)   ;;  %v289_v1 = vld [vmem:[%s268_s22 + $0x8] sm:$0xff] (%p37_p5)   ;;  %v293_v2 = vld [vmem:[%s268_s22 + $0x10] sm:$0xff] (%p37_p5)   ;;  %s264_s23 = scalar_lea.vmem (%p37_p5), [#allocation2], %s3787_s19 }
  0x15   : > { %v297_v3 = vld [vmem:[%s268_s22 + $0x18] sm:$0xff] (%p37_p5)   ;;  %v301_v4 = vld [vmem:[%s268_s22 + $0x40] sm:$0xff] (%p37_p5)   ;;  %v305_v5 = vld [vmem:[%s268_s22 + $0x48] sm:$0xff] (%p37_p5)   ;;  %286 = vst [vmem:[%s264_s23] sm:$0xff] (%p37_p5), %v285_v0  }
  0x16   : > { %290 = vst [vmem:[%s264_s23 + $0x8] sm:$0xff] %v289_v1   ;;  %294 = vst [vmem:[%s264_s23 + $0x10] sm:$0xff] %v293_v2   ;;  %v309_v6 = vld [vmem:[%s268_s22 + $0x50] sm:$0xff]   ;;  %v313_v7 = vld [vmem:[%s268_s22 + $0x58] sm:$0xff]  }
  0x17   : > { %298 = vst [vmem:[%s264_s23 + $0x18] sm:$0xff] %v297_v3   ;;  %302 = vst [vmem:[%s264_s23 + $0x20] sm:$0xff] %v301_v4   ;;  %v317_v8 = vld [vmem:[%s268_s22 + $0x80] sm:$0xff]   ;;  %v321_v9 = vld [vmem:[%s268_s22 + $0x88] sm:$0xff]  }
  0x18   : > { %306 = vst [vmem:[%s264_s23 + $0x28] sm:$0xff] %v305_v5   ;;  %310 = vst [vmem:[%s264_s23 + $0x30] sm:$0xff] %v309_v6   ;;  %v325_v10 = vld [vmem:[%s268_s22 + $0x90] sm:$0xff]   ;;  %v329_v11 = vld [vmem:[%s268_s22 + $0x98] sm:$0xff]  }
  0x19   : > { %314 = vst [vmem:[%s264_s23 + $0x38] sm:$0xff] %v313_v7   ;;  %318 = vst [vmem:[%s264_s23 + $0x40] sm:$0xff] %v317_v8  }
  0x1a   : > { %322 = vst [vmem:[%s264_s23 + $0x48] sm:$0xff] %v321_v9   ;;  %326 = vst [vmem:[%s264_s23 + $0x50] sm:$0xff] %v325_v10  }
  0x1b   : > { %330 = vst [vmem:[%s264_s23 + $0x58] sm:$0xff] %v329_v11  }
  0x1c PF: > { %p3252_p10 = scmp.ge.s32.totalorder %s3927_s30, 1  ;;  %p413_p11 = scmp.lt.s32.totalorder %s3927_s30, 3 }
  0x1e   : > { %p414_p12 = pnand %p3252_p10, %p413_p11 }
  0x1f   : > { %s3254_s24 = sshll.u32 (!%p414_p12), %s4001_s9, 2  ;;  %s4039_s25 = sand.u32 (!%p414_p12), 1, %s3919_s28  }
  0x20   : > { %417 = sbr.rel (%p414_p12) target bundleno = 1531 (0x5fb), region = 89  ;;  %p461_p13 = scmp.lt.s32.totalorder (!%p414_p12), %s3254_s24, 7 }
  0x21   : > { %s3788_s26 = smul.u32 (!%p414_p12), 96, %s4039_s25  ;;  %s3929_s19 = smov (!%p414_p12), 8  }
  0x22   : > { %s3930_s20 = smov (!%p414_p12), 16  }
  0x23   : > { %s4042_s12 = scalar_lea.vmem (!%p414_p12), [#allocation2], %s3788_s26  ;;  %s3931_s26 = smov (!%p414_p12), 32  }
  0x25   : > { %s4608_s24 = smov (!%p461_p13, %s3254_s24), 7  ;;  %v4045_v12 = vld [vmem:[%s4042_s12] sm:$0xff]   ;;  %v4048_v13 = vld [vmem:[%s4042_s12 + $0x28] sm:$0xff]   ;;  %vm527_vm0 = vcmask 130048   ;;  %v4081_v24 = vld [vmem:[%s4042_s12 + $0x38] sm:$0xff]   ;;  %vm1564_vm1 = vcmask 64512  }
  0x26   : > { %s3346_s10 = sshll.u32 %s4608_s24, 4  ;;  %v3349_v17 = vunpack.c.l.bf16 %v4045_v12  ;;  %v3369_v19 = vunpack.c.l.bf16 %v4048_v13  ;;  %v3350_v20 = vunpack.c.h.bf16 %v4045_v12  ;;  %v3370_v21 = vunpack.c.h.bf16 %v4048_v13  ;;  %v4071_v22 = vld [vmem:[%s4042_s12 + $0x8] sm:$0xff]   ;;  %v4106_v31 = vld [vmem:[%s4042_s12 + $0x10] sm:$0xff]   ;;  %v4131_v36 = vld [vmem:[%s4042_s12 + $0x18] sm:$0xff]  }
  0x27   : > { %s4053_s18 = scalar_lea.vmem %s4593_s1, %s3346_s10  ;;  %v3353_v26 = vunpack.c.l.bf16 %v4071_v22  ;;  %v3377_v27 = vunpack.c.l.bf16 %v4081_v24  ;;  %v3354_v28 = vunpack.c.h.bf16 %v4071_v22  ;;  %v3378_v29 = vunpack.c.h.bf16 %v4081_v24  ;;  %v4112_v32 = vld [vmem:[%s4042_s12 + $0x48] sm:$0xff]   ;;  %v4143_v40 = vld [vmem:[%s4042_s12 + $0x20] sm:$0xff]   ;;  %v4163_v43 = vld [vmem:[%s4042_s12 + $0x30] sm:$0xff]  }
  0x28   : > { %v4056_v14 = vld [vmem:[%s4053_s18 + $0x8] sm:$0xff]  ;;  %v518_v15 = vld [vmem:[%s4053_s18 + $0x18] sm:$0xff]  ;;  %v4060_v16 = vld [vmem:[%s4053_s18] sm:$0xff]  ;;  %3549 = vmatprep.mubr.msk.f32.mxu0 %vm527_vm0, %v3349_v17  ;;  %3584 = vmatprep.mubr.msk.f32.mxu1 %vm527_vm0, %v3369_v19  ;;  %v3357_v34 = vunpack.c.l.bf16 %v4106_v31  ;;  %v3385_v35 = vunpack.c.l.bf16 %v4112_v32  ;;  %v3358_v37 = vunpack.c.h.bf16 %v4106_v31  ;;  %v3386_v38 = vunpack.c.h.bf16 %v4112_v32 }
  0x29   : > { %3545 = vmatprep.subr.mxu0 %v4056_v14  ;;  %3580 = vmatprep.subr.mxu1 %v518_v15  ;;  %v517_v18 = vld [vmem:[%s4053_s18 + $0x10] sm:$0xff]  ;;  %v4078_v23 = vld [vmem:[%s4053_s18 + $0x38] sm:$0xff]  ;;  %v4103_v30 = vld [vmem:[%s4053_s18 + $0x28] sm:$0xff]  ;;  %v3361_v39 = vunpack.c.l.bf16 %v4131_v36  ;;  %v3362_v41 = vunpack.c.h.bf16 %v4131_v36  ;;  %v3365_v42 = vunpack.c.l.bf16 %v4143_v40  ;;  %v3366_v44 = vunpack.c.h.bf16 %v4143_v40 }
  0x2a   : > { %3546 = vmatpush3.msra.mxu0 %v4056_v14  ;;  %3581 = vmatpush3.msra.mxu1 %v518_v15  ;;  %v4090_v25 = vld [vmem:[%s4053_s18 + $0x30] sm:$0xff]  ;;  %v4123_v33 = vld [vmem:[%s4053_s18 + $0x20] sm:$0xff]  ;;  %v4173_v45 = vld [vmem:[%s4042_s12 + $0x58] sm:$0xff]   ;;  %v3373_v46 = vunpack.c.l.bf16 %v4163_v43  ;;  %v3374_v49 = vunpack.c.h.bf16 %v4163_v43  ;;  %vm1587_vm2 = vcmask 195584   ;;  %vm2702_vm3 = vcmask 261120  }
  0x2b   : > { %3547 = vmatprep.subr.mxu0 %v4060_v16  ;;  %3582 = vmatprep.subr.mxu1 %v517_v18  ;;  %v4182_v47 = vld [vmem:[%s4042_s12 + $0x40] sm:$0xff]   ;;  %v3393_v48 = vunpack.c.l.bf16 %v4173_v45  ;;  %v4200_v51 = vld [vmem:[%s4042_s12 + $0x50] sm:$0xff]   ;;  %v3394_v52 = vunpack.c.h.bf16 %v4173_v45  ;;  %v524_v6 = vld [vmem:[%s4594_s2 + $0x8] sm:$0xff]  ;;  %vm2726_vm4 = vcmask 785408   ;;  %vm2711_vm5 = vcmask 523264   ;;  %s3156_s12 = scalar_lea.sflag [#allocation4], %s4039_s25 }
  0x2c   : > { %3548 = vmatpush3.msra.mxu0 %v4060_v16  ;;  %3583 = vmatpush3.msra.mxu1 %v517_v18  ;;  %v3381_v50 = vunpack.c.l.bf16 %v4182_v47  ;;  %v3382_v53 = vunpack.c.h.bf16 %v4182_v47  ;;  %v3389_v54 = vunpack.c.l.bf16 %v4200_v51  ;;  %v3390_v55 = vunpack.c.h.bf16 %v4200_v51  ;;  %v525_v5 = vld [vmem:[%s4594_s2 + $0x10] sm:$0xff]  ;;  %v523_v9 = vld [vmem:[%s4594_s2] sm:$0xff]  ;;  %v1736_v22 = vld [vmem:[%s4596_s4 + $0x58] sm:$0xff] }
  0x2d   : > { %3550 = vmatmul.mubr.msk.f32.vlgmr.msra.gmra.mxu0 %vm527_vm0, %v3350_v20  ;;  %3552 = vmatprep.subr.mxu0 %v518_v15  ;;  %v1735_v24 = vld [vmem:[%s4596_s4 + $0x50] sm:$0xff]  ;;  %vm3100_vm6 = vcmask 31744   ;;  %vm3146_vm7 = vcmask 1041409   ;;  %vm3148_vm8 = vcmask 1042434   ;;  %vm3150_vm9 = vcmask 1043459  }
  0x2e   : > { %3585 = vmatmul.mubr.msk.f32.vlgmr.msra.gmra.mxu1 %vm527_vm0, %v3370_v21  ;;  %3594 = vmatprep.subr.mxu1 %v4078_v23  ;;  %v1727_v47 = vld [vmem:[%s4596_s4 + $0x10] sm:$0xff]  ;;  %vm3153_vm10 = vcmask 27648  }
  0x2f   : > { %3553 = vmatpush3.msra.mxu0 %v518_v15  ;;  %3595 = vmatpush3.msra.mxu1 %v4078_v23 }
  0x30   : > { %3554 = vmatprep.subr.mxu0 %v517_v18  ;;  %3596 = vmatprep.subr.mxu1 %v4090_v25 }
  0x31   : > { %3555 = vmatpush3.msra.mxu0 %v517_v18  ;;  %3556 = vmatprep.mubr.msk.f32.mxu0 %vm527_vm0, %v3353_v26 }
  0x32   : > { %3597 = vmatpush3.msra.mxu1 %v4090_v25  ;;  %3598 = vmatprep.mubr.msk.f32.mxu1 %vm527_vm0, %v3377_v27 }
  0x33   : > { %3557 = vmatmul.mubr.msk.f32.vlgmr.msra.gmra.mxu0 %vm527_vm0, %v3354_v28  ;;  %3559 = vmatprep.subr.mxu0 %v4103_v30 }
  0x34   : > { %3599 = vmatmul.mubr.msk.f32.vlgmr.msra.gmra.mxu1 %vm527_vm0, %v3378_v29  ;;  %3608 = vmatprep.subr.mxu1 %v518_v15 }
  0x35   : > { %3560 = vmatpush3.msra.mxu0 %v4103_v30  ;;  %3609 = vmatpush3.msra.mxu1 %v518_v15 }
  0x36   : > { %3561 = vmatprep.subr.mxu0 %v4123_v33  ;;  %3610 = vmatprep.subr.mxu1 %v517_v18 }
  0x37   : > { %3562 = vmatpush3.msra.mxu0 %v4123_v33  ;;  %3563 = vmatprep.mubr.msk.f32.mxu0 %vm527_vm0, %v3357_v34 }
  0x38   : > { %3611 = vmatpush3.msra.mxu1 %v517_v18  ;;  %3612 = vmatprep.mubr.msk.f32.mxu1 %vm527_vm0, %v3385_v35 }
  0x39   : > { %3564 = vmatmul.mubr.msk.f32.vlgmr.msra.gmra.mxu0 %vm527_vm0, %v3358_v37  ;;  %3566 = vmatprep.subr.mxu0 %v4078_v23 }
  0x3a   : > { %3613 = vmatmul.mubr.msk.f32.vlgmr.msra.gmra.mxu1 %vm527_vm0, %v3386_v38  ;;  %3567 = vmatpush3.msra.mxu0 %v4078_v23 }
  0x3b   : > { %3568 = vmatprep.subr.mxu0 %v4090_v25  ;;  %3570 = vmatprep.mubr.msk.f32.mxu0 %vm527_vm0, %v3361_v39 }
  0x3c   : > { %3569 = vmatpush3.msra.mxu0 %v4090_v25  ;;  %3622 = vmatprep.subr.mxu1 %v4078_v23 }
  0x3d   : > { %3571 = vmatmul.mubr.msk.f32.vlgmr.msra.gmra.mxu0 %vm527_vm0, %v3362_v41  ;;  %3573 = vmatprep.subr.mxu0 %v4056_v14 }
  0x3e   : > { %3574 = vmatpush3.msra.mxu0 %v4056_v14  ;;  %3577 = vmatprep.mubr.msk.f32.mxu0 %vm527_vm0, %v3365_v42 }
  0x3f   : > { %3575 = vmatprep.subr.mxu0 %v4060_v16  ;;  %3623 = vmatpush3.msra.mxu1 %v4078_v23 }
  0x40   : > { %3576 = vmatpush3.msra.mxu0 %v4060_v16  ;;  %3624 = vmatprep.subr.mxu1 %v4090_v25 }
  0x41   : > { %3578 = vmatmul.mubr.msk.f32.vlgmr.msra.gmra.mxu0 %vm527_vm0, %v3366_v44  ;;  %3587 = vmatprep.subr.mxu0 %v4103_v30 }
  0x42   : > { %3588 = vmatpush3.msra.mxu0 %v4103_v30  ;;  %3591 = vmatprep.mubr.msk.f32.mxu0 %vm527_vm0, %v3373_v46 }
  0x43   : > { %3589 = vmatprep.subr.mxu0 %v4123_v33  ;;  %3625 = vmatpush3.msra.mxu1 %v4090_v25 }
  0x44   : > { %3590 = vmatpush3.msra.mxu0 %v4123_v33  ;;  %3626 = vmatprep.mubr.msk.f32.mxu1 %vm527_vm0, %v3393_v48 }
  0x45   : > { %3592 = vmatmul.mubr.msk.f32.vlgmr.msra.gmra.mxu0 %vm527_vm0, %v3374_v49  ;;  %3601 = vmatprep.subr.mxu0 %v4056_v14 }
  0x46   : > { %3602 = vmatpush3.msra.mxu0 %v4056_v14  ;;  %3605 = vmatprep.mubr.msk.f32.mxu0 %vm527_vm0, %v3381_v50 }
  0x47   : > { %3603 = vmatprep.subr.mxu0 %v4060_v16  ;;  %3627 = vmatmul.mubr.msk.f32.vlgmr.msra.gmra.mxu1 %vm527_vm0, %v3394_v52 }
  0x48   : > { %3604 = vmatpush3.msra.mxu0 %v4060_v16  ;;  %3651 = vmatprep.mubr.msk.f32.mxu1 %vm527_vm0, %v3349_v17 }
  0x49   : > { %3606 = vmatmul.mubr.msk.f32.vlgmr.msra.gmra.mxu0 %vm527_vm0, %v3382_v53  ;;  %3615 = vmatprep.subr.mxu0 %v4103_v30 }
  0x4a   : > { %3616 = vmatpush3.msra.mxu0 %v4103_v30  ;;  %3619 = vmatprep.mubr.msk.f32.mxu0 %vm527_vm0, %v3389_v54 }
  0x4b   : > { %3617 = vmatprep.subr.mxu0 %v4123_v33 }
  0x4c   : > { %3618 = vmatpush3.msra.mxu0 %v4123_v33 }
  0x4d   : > { %3620 = vmatmul.mubr.msk.f32.vlgmr.msra.gmra.mxu0 %vm527_vm0, %v3390_v55  ;;  %3629 = vmatprep.subr.mxu0 %v525_v5 }
  0x4e   : > { %3630 = vmatpush3.msra.mxu0 %v525_v5 }
  0x4f   : > { %3631 = vmatprep.subr.mxu0 %v524_v6 }
  0x50   : > { %3632 = vmatpush3.msra.mxu0 %v524_v6 }
  0x51   : > { %3633 = vmatprep.subr.mxu0 %v523_v9 }
  0x52   : > { %3634 = vmatpush3.msra.mxu0 %v523_v9 }
  0xed   : > { %v4240_v56 = vpop.f32.mrf.mxu0 }
  0xee   : > { %v3586_v57 = vpop.f32.mrf.mxu1 }
  0xef   : > { %1514 = vrot.lane.b32.xlu1 %v3586_v57, %s3929_s19  ;;  %v600_v58 = vpop.f32.mrf.mxu0 }
  0xf0   : > { %v1005_v59 = vpop.f32.mrf.mxu1 }
  0xf1   : > { %1512 = vrot.lane.b32.xlu0 %v1005_v59, %s3929_s19 }
  0xf3   : > { %v4244_v60 = vpop.f32.mrf.mxu0 }
  0xf4   : > { %v3600_v61 = vpop.f32.mrf.mxu1 }
  0xf5   : > { %v681_v62 = vpop.f32.mrf.mxu0 }
  0xf6   : > { %v1167_v63 = vpop.f32.mrf.mxu1 }
  0xf9   : > { %v4246_v0 = vpop.f32.mrf.mxu0 }
  0xfa   : > { %v3614_v1 = vpop.f32.mrf.mxu1 }
  0xfb   : > { %1546 = vrot.lane.b32.xlu1 %v3614_v1, %s3930_s20  ;;  %v762_v2 = vpop.f32.mrf.mxu0 }
  0xfc   : > { %v1329_v3 = vpop.f32.mrf.mxu1 }
  0xfd   : > { %1544 = vrot.lane.b32.xlu0 %v1329_v3, %s3930_s20  ;;  %v4250_v4 = vpop.f32.mrf.mxu0 }
  0xff   : > { %v4258_v7 = vpop.f32.mrf.mxu0 }
 0x101   : > { %v3579_v8 = vpop.f32.mrf.mxu0 }
 0x102   : > { %1510 = vrot.lane.b32.xlu0 %v3579_v8, %s3929_s19 }
 0x103   : > { %v924_v10 = vpop.f32.mrf.mxu0 }
 0x105   : > { %v3593_v11 = vpop.f32.mrf.mxu0 }
 0x106   : > { %1508 = vrot.lane.b32.xlu0 %v924_v10, %s3929_s19 }
 0x107   : > { %v1086_v14 = vpop.f32.mrf.mxu0  ;;  %v3628_v23 = vpop.f32.mrf.mxu1 }
 0x109   : > { %v3607_v15 = vpop.f32.mrf.mxu0  ;;  %v1491_v25 = vpop.f32.mrf.mxu1 }
 0x10a   : > { %1516 = vrot.lane.b32.xlu0 %v1086_v14, %s3929_s19  ;;  %1542 = vrot.lane.b32.xlu1 %v3607_v15, %s3930_s20 }
 0x10b   : > { %v1248_v16 = vpop.f32.mrf.mxu0 }
 0x10d   : > { %v3621_v17 = vpop.f32.mrf.mxu0 }
 0x10e   : > { %1520 = vrot.lane.b32.xlu0 %v1167_v63, %s3929_s19  ;;  %1540 = vrot.lane.b32.xlu1 %v1248_v16, %s3930_s20 }
 0x10f   : > { %v1410_v18 = vpop.f32.mrf.mxu0 }
 0x112   : > { %1518 = vrot.lane.b32.xlu1 %v3593_v11, %s3929_s19  ;;  %1548 = vrot.lane.b32.xlu0 %v1410_v18, %s3930_s20 }
 0x116   : > { %1522 = vrot.lane.b32.xlu1 %v3600_v61, %s3929_s19  ;;  %1552 = vrot.lane.b32.xlu0 %v1491_v25, %s3930_s20  ;;  %s3932_s19 = smov 64  }
 0x11a   : > { %1550 = vrot.lane.b32.xlu1 %v3621_v17, %s3930_s20 }
 0x11e   : > { %1554 = vrot.lane.b32.xlu1 %v3628_v23, %s3930_s20  ;;  %s3341_s20 = sshll.u32 %s4001_s9, 6  ;;  %s3934_s9 = smov [#allocation3]  }
 0x11f   : > { %s4555_s10 = scalar_lea.hbm %s4600_s8, %s3341_s20  ;;  %s3871_s17 = sshll.u32 %s3934_s9, 4  ;;  %s3872_s17 = int_to_ptr.vmem [resolvable:$false] %s3871_s17 }
 0x120   : > { %s3873_s18 = scalar_lea.vmem %s3872_s17, 128 }
 0x161   : > { %v1515_v57 = vpop.permute.xlu1 %1514 }
 0x162   : > { %v1568_v17 = vsel %vm1564_vm1, %v4244_v60, %v1515_v57 }
 0x163   : > { %v1513_v30 = vpop.permute.xlu0 %1512 }
 0x164   : > { %v1567_v11 = vsel %vm1564_vm1, %v681_v62, %v1513_v30 }
 0x16d   : > { %v1547_v63 = vpop.permute.xlu1 %1546 }
 0x16f   : > { %v1545_v33 = vpop.permute.xlu0 %1544 }
 0x170   : > { %v1575_v15 = vsel %vm527_vm0, %v1567_v11, %v1545_v33 }
 0x174   : > { %v1511_v59 = vpop.permute.xlu0 %1510 }
 0x175   : > { %v1566_v9 = vsel %vm1564_vm1, %v4240_v56, %v1511_v59  ;;  %v1576_v56 = vsel %vm527_vm0, %v1568_v17, %v1547_v63 }
 0x178   : > { %v1509_v1 = vpop.permute.xlu0 %1508 }
 0x179   : > { %v1565_v6 = vsel %vm1564_vm1, %v600_v58, %v1509_v1 }
 0x17c   : > { %v1517_v3 = vpop.permute.xlu0 %1516  ;;  %v1543_v5 = vpop.permute.xlu1 %1542 }
 0x17d   : > { %v1574_v14 = vsel %vm527_vm0, %v1566_v9, %v1543_v5  ;;  %v1569_v18 = vsel %vm1564_vm1, %v762_v2, %v1517_v3 }
 0x180   : > { %v1521_v8 = vpop.permute.xlu0 %1520  ;;  %v1541_v61 = vpop.permute.xlu1 %1540 }
 0x181   : > { %v1573_v10 = vsel %vm527_vm0, %v1565_v6, %v1541_v61  ;;  %v1571_v59 = vsel %vm1564_vm1, %v4258_v7, %v1521_v8 }
 0x182   : > { %3635 = vmatprep.mubr.msk.f32.mxu0 %vm1587_vm2, %v1573_v10 }
 0x183   : > { %3636 = vmatmul.mubr.msk.f32.vlgmr.msra.gmra.mxu0 %vm1587_vm2, %v1574_v14 }
 0x184   : > { %3638 = vmatprep.mubr.msk.f32.mxu0 %vm1587_vm2, %v1575_v15  ;;  %v1519_v58 = vpop.permute.xlu1 %1518  ;;  %v1549_v16 = vpop.permute.xlu0 %1548 }
 0x185   : > { %v1577_v62 = vsel %vm527_vm0, %v1569_v18, %v1549_v16  ;;  %v1570_v30 = vsel %vm1564_vm1, %v4246_v0, %v1519_v58  ;;  %v3281_v0 = vld [vmem:[%s4595_s3] ss:$0 sm:$0xff] }
 0x187   : > { %3639 = vmatmul.mubr.msk.f32.gmra.mxu0 %vm1587_vm2, %v1576_v56 }
 0x188   : > { %v1523_v23 = vpop.permute.xlu1 %1522  ;;  %3641 = vmatprep.mubr.msk.f32.mxu0 %vm1587_vm2, %v1577_v62  ;;  %v1553_v25 = vpop.permute.xlu0 %1552 }
 0x189   : > { %v1579_v57 = vsel %vm527_vm0, %v1571_v59, %v1553_v25  ;;  %v1572_v2 = vsel %vm1564_vm1, %v4250_v4, %v1523_v23 }
 0x18c   : > { %v1551_v33 = vpop.permute.xlu1 %1550 }
 0x18d   : > { %v1578_v60 = vsel %vm527_vm0, %v1570_v30, %v1551_v33 }
 0x18e   : > { %3642 = vmatmul.mubr.msk.f32.gmra.mxu0 %vm1587_vm2, %v1578_v60 }
 0x18f   : > { %3644 = vmatprep.mubr.msk.f32.mxu0 %vm1587_vm2, %v1579_v57 }
 0x190   : > { %v1555_v63 = vpop.permute.xlu1 %1554 }
 0x191   : > { %v1580_v1 = vsel %vm527_vm0, %v1572_v2, %v1555_v63 }
 0x192   : > { %3645 = vmatmul.mubr.msk.f32.gmra.mxu0 %vm1587_vm2, %v1580_v1 }
 0x193   : > { %3686 = vmatprep.mubr.msk.f32.mxu0 %vm527_vm0, %v3369_v19 }
 0x243   : > { %v3637_v7 = vpop.f32.mrf.mxu0 }
 0x244   : > { %v1684_v3 = vadd.f32 %v3637_v7, %v3281_v0 }
 0x245   : > { %v1678_v5 = vpop.f32.mrf.mxu0 }
 0x246   : > { %v4310_v6 = vmax.f32 %v1684_v3, 0.0  ;;  %v1679_v8 = vadd.f32 %v3281_v0, %v1678_v5 }
 0x247   : > { %v3640_v4 = vpop.f32.mrf.mxu0 }
 0x248   : > { %v4312_v61 = vmax.f32 %v1679_v8, 0.0  ;;  %v1694_v9 = vadd.f32 %v3640_v4, %v3281_v0  ;;  %3647 = vmatprep.subr.mxu1 %v4310_v6 }
 0x249   : > { %v1688_v10 = vpop.f32.mrf.mxu0  ;;  %3648 = vmatpush3.msra.mxu1 %v4310_v6 }
 0x24a   : > { %v1720_v19 = vmax.f32 %v1694_v9, 0.0  ;;  %v1689_v11 = vadd.f32 %v3281_v0, %v1688_v10  ;;  %3649 = vmatprep.subr.mxu1 %v4312_v61 }
 0x24b   : > { %3650 = vmatpush3.msra.mxu1 %v4312_v61 }
 0x24c   : > { %v1719_v14 = vmax.f32 %v1689_v11, 0.0  ;;  %3654 = vmatprep.subr.mxu1 %v1720_v19  ;;  %3682 = vmatprep.subr.mxu0 %v1720_v19 }
 0x24d   : > { %3652 = vmatmul.mubr.msk.f32.vlgmr.msra.gmra.mxu1 %vm527_vm0, %v3350_v20  ;;  %3683 = vmatpush3.msra.mxu0 %v1720_v19 }
 0x24e   : > { %3655 = vmatpush3.msra.mxu1 %v1720_v19  ;;  %v3643_v15 = vpop.f32.mrf.mxu0  ;;  %3684 = vmatprep.subr.mxu0 %v1719_v14 }
 0x24f   : > { %v1704_v58 = vadd.f32 %v3643_v15, %v3281_v0  ;;  %3656 = vmatprep.subr.mxu1 %v1719_v14  ;;  %3685 = vmatpush3.msra.mxu0 %v1719_v14 }
 0x250   : > { %3657 = vmatpush3.msra.mxu1 %v1719_v14  ;;  %v1698_v16 = vpop.f32.mrf.mxu0  ;;  %3687 = vmatmul.mubr.msk.f32.vlgmr.msra.gmra.mxu0 %vm527_vm0, %v3370_v21 }
 0x251   : > { %v1722_v17 = vmax.f32 %v1704_v58, 0.0  ;;  %v1699_v56 = vadd.f32 %v3281_v0, %v1698_v16  ;;  %3658 = vmatprep.mubr.msk.f32.mxu1 %vm527_vm0, %v3353_v26  ;;  %3700 = vmatprep.mubr.msk.f32.mxu0 %vm527_vm0, %v3377_v27  ;;  %v1734_v27 = vld [vmem:[%s4596_s4 + $0x48] sm:$0xff] }
 0x252   : > { %v3646_v12 = vpop.f32.mrf.mxu0  ;;  %3659 = vmatmul.mubr.msk.f32.vlgmr.msra.gmra.mxu1 %vm527_vm0, %v3354_v28  ;;  %v1733_v28 = vld [vmem:[%s4596_s4 + $0x40] sm:$0xff] }
 0x253   : > { %v1721_v20 = vmax.f32 %v1699_v56, 0.0  ;;  %v1714_v18 = vadd.f32 %v3646_v12, %v3281_v0  ;;  %3661 = vmatprep.subr.mxu1 %v1722_v17  ;;  %3665 = vmatprep.mubr.msk.f32.mxu1 %vm527_vm0, %v3357_v34 }
 0x254   : > { %v1708_v13 = vpop.f32.mrf.mxu0  ;;  %3662 = vmatpush3.msra.mxu1 %v1722_v17 }
 0x255   : > { %v1724_v21 = vmax.f32 %v1714_v18, 0.0  ;;  %v1709_v26 = vadd.f32 %v3281_v0, %v1708_v13  ;;  %3663 = vmatprep.subr.mxu1 %v1721_v20 }
 0x256   : > { %3664 = vmatpush3.msra.mxu1 %v1721_v20 }
 0x257   : > { %v1723_v62 = vmax.f32 %v1709_v26, 0.0  ;;  %3666 = vmatmul.mubr.msk.f32.vlgmr.msra.gmra.mxu1 %vm527_vm0, %v3358_v37  ;;  %3668 = vmatprep.subr.mxu1 %v1724_v21  ;;  %v1732_v37 = vld [vmem:[%s4596_s4 + $0x38] sm:$0xff] }
 0x258   : > { %3696 = vmatprep.subr.mxu0 %v1724_v21  ;;  %3669 = vmatpush3.msra.mxu1 %v1724_v21 }
 0x259   : > { %3697 = vmatpush3.msra.mxu0 %v1724_v21  ;;  %3670 = vmatprep.subr.mxu1 %v1723_v62 }
 0x25a   : > { %3698 = vmatprep.subr.mxu0 %v1723_v62  ;;  %3671 = vmatpush3.msra.mxu1 %v1723_v62 }
 0x25b   : > { %3672 = vmatprep.mubr.msk.f32.mxu1 %vm527_vm0, %v3361_v39  ;;  %3699 = vmatpush3.msra.mxu0 %v1723_v62  ;;  %v1731_v39 = vld [vmem:[%s4596_s4 + $0x30] sm:$0xff] }
 0x25c   : > { %3673 = vmatmul.mubr.msk.f32.vlgmr.msra.gmra.mxu1 %vm527_vm0, %v3362_v41  ;;  %3675 = vmatprep.subr.mxu1 %v4310_v6  ;;  %v1730_v41 = vld [vmem:[%s4596_s4 + $0x28] sm:$0xff] }
 0x25d   : > { %3710 = vmatprep.subr.mxu0 %v1720_v19  ;;  %3676 = vmatpush3.msra.mxu1 %v4310_v6 }
 0x25e   : > { %3701 = vmatmul.mubr.msk.f32.vlgmr.msra.gmra.mxu0 %vm527_vm0, %v3378_v29  ;;  %3677 = vmatprep.subr.mxu1 %v4312_v61 }
 0x25f   : > { %3711 = vmatpush3.msra.mxu0 %v1720_v19  ;;  %3678 = vmatpush3.msra.mxu1 %v4312_v61 }
 0x260   : > { %3712 = vmatprep.subr.mxu0 %v1719_v14  ;;  %3679 = vmatprep.mubr.msk.f32.mxu1 %vm527_vm0, %v3365_v42  ;;  %v1729_v42 = vld [vmem:[%s4596_s4 + $0x20] sm:$0xff] }
 0x261   : > { %3713 = vmatpush3.msra.mxu0 %v1719_v14  ;;  %3680 = vmatmul.mubr.msk.f32.vlgmr.msra.gmra.mxu1 %vm527_vm0, %v3366_v44  ;;  %v1728_v44 = vld [vmem:[%s4596_s4 + $0x18] sm:$0xff] }
 0x262   : > { %3689 = vmatprep.subr.mxu1 %v1722_v17  ;;  %3714 = vmatprep.mubr.msk.f32.mxu0 %vm527_vm0, %v3385_v35 }
 0x263   : > { %3724 = vmatprep.subr.mxu0 %v1724_v21  ;;  %3690 = vmatpush3.msra.mxu1 %v1722_v17 }
 0x264   : > { %3715 = vmatmul.mubr.msk.f32.vlgmr.msra.gmra.mxu0 %vm527_vm0, %v3386_v38  ;;  %3691 = vmatprep.subr.mxu1 %v1721_v20 }
 0x265   : > { %3725 = vmatpush3.msra.mxu0 %v1724_v21  ;;  %3692 = vmatpush3.msra.mxu1 %v1721_v20 }
 0x266   : > { %3726 = vmatprep.subr.mxu0 %v1723_v62  ;;  %3693 = vmatprep.mubr.msk.f32.mxu1 %vm527_vm0, %v3373_v46 }
 0x267   : > { %3727 = vmatpush3.msra.mxu0 %v1723_v62  ;;  %3703 = vmatprep.subr.mxu1 %v4310_v6 }
 0x268   : > { %3694 = vmatmul.mubr.msk.f32.vlgmr.msra.gmra.mxu1 %vm527_vm0, %v3374_v49  ;;  %3728 = vmatprep.mubr.msk.f32.mxu0 %vm527_vm0, %v3393_v48 }
 0x269   : > { %3704 = vmatpush3.msra.mxu1 %v4310_v6  ;;  %3707 = vmatprep.mubr.msk.f32.mxu1 %vm527_vm0, %v3381_v50  ;;  %v1726_v50 = vld [vmem:[%s4596_s4 + $0x8] sm:$0xff] }
 0x26a   : > { %3705 = vmatprep.subr.mxu1 %v4312_v61  ;;  %3729 = vmatmul.mubr.msk.f32.vlgmr.msra.gmra.mxu0 %vm527_vm0, %v3394_v52  ;;  %v1725_v52 = vld [vmem:[%s4596_s4] sm:$0xff] }
 0x26b   : > { %3706 = vmatpush3.msra.mxu1 %v4312_v61 }
 0x26c   : > { %3717 = vmatprep.subr.mxu1 %v1722_v17  ;;  %3708 = vmatmul.mubr.msk.f32.vlgmr.msra.gmra.mxu1 %vm527_vm0, %v3382_v53 }
 0x26d   : > { %3718 = vmatpush3.msra.mxu1 %v1722_v17  ;;  %3721 = vmatprep.mubr.msk.f32.mxu1 %vm527_vm0, %v3389_v54 }
 0x26e   : > { %3719 = vmatprep.subr.mxu1 %v1721_v20 }
 0x26f   : > { %3720 = vmatpush3.msra.mxu1 %v1721_v20 }
 0x270   : > { %3722 = vmatmul.mubr.msk.f32.vlgmr.msra.gmra.mxu1 %vm527_vm0, %v3390_v55  ;;  %3731 = vmatprep.subr.mxu1 %v1736_v22 }
 0x271   : > { %3732 = vmatpush3.msra.mxu1 %v1736_v22 }
 0x272   : > { %3733 = vmatprep.subr.mxu1 %v1735_v24 }
 0x273   : > { %3734 = vmatpush3.msra.mxu1 %v1735_v24 }
 0x274   : > { %3735 = vmatprep.subr.mxu1 %v1734_v27 }
 0x275   : > { %3736 = vmatpush3.msra.mxu1 %v1734_v27 }
 0x276   : > { %3737 = vmatprep.subr.mxu1 %v1733_v28 }
 0x277   : > { %3738 = vmatpush3.msra.mxu1 %v1733_v28 }
 0x278   : > { %3739 = vmatprep.subr.mxu1 %v1732_v37 }
 0x279   : > { %3740 = vmatpush3.msra.mxu1 %v1732_v37 }
 0x27a   : > { %3741 = vmatprep.subr.mxu1 %v1731_v39 }
 0x27b   : > { %3742 = vmatpush3.msra.mxu1 %v1731_v39 }
 0x27c   : > { %3743 = vmatprep.subr.mxu1 %v1730_v41 }
 0x27d   : > { %3744 = vmatpush3.msra.mxu1 %v1730_v41 }
 0x27e   : > { %3745 = vmatprep.subr.mxu1 %v1729_v42 }
 0x27f   : > { %3746 = vmatpush3.msra.mxu1 %v1729_v42 }
 0x280   : > { %3747 = vmatprep.subr.mxu1 %v1728_v44 }
 0x281   : > { %3748 = vmatpush3.msra.mxu1 %v1728_v44 }
 0x282   : > { %3749 = vmatprep.subr.mxu1 %v1727_v47 }
 0x283   : > { %3750 = vmatpush3.msra.mxu1 %v1727_v47 }
 0x284   : > { %3751 = vmatprep.subr.mxu1 %v1726_v50 }
 0x285   : > { %3752 = vmatpush3.msra.mxu1 %v1726_v50 }
 0x286   : > { %3753 = vmatprep.subr.mxu1 %v1725_v52 }
 0x287   : > { %3754 = vmatpush3.msra.mxu1 %v1725_v52 }
 0x30d   : > { %v4404_v29 = vpop.f32.mrf.mxu1 }
 0x30f   : > { %v4406_v31 = vpop.f32.mrf.mxu1 }
 0x310   : > { %v3688_v32 = vpop.f32.mrf.mxu0 }
 0x311   : > { %2652 = vrot.lane.b32.xlu1 %v3688_v32, %s3931_s26  ;;  %v2865_v32 = vld [vmem:[%s4598_s6 + $0x8] sm:$0xff] }
 0x312   : > { %v2179_v34 = vpop.f32.mrf.mxu0  ;;  %v4409_v35 = vpop.f32.mrf.mxu1 }
 0x313   : > { %2650 = vrot.lane.b32.xlu0 %v2179_v34, %s3931_s26  ;;  %v2864_v34 = vld [vmem:[%s4598_s6] sm:$0xff] }
 0x314   : > { %v4412_v36 = vpop.f32.mrf.mxu1 }
 0x317   : > { %v4417_v38 = vpop.f32.mrf.mxu1 }
 0x319   : > { %v4422_v40 = vpop.f32.mrf.mxu1 }
 0x31c   : > { %v4430_v43 = vpop.f32.mrf.mxu1 }
 0x31e   : > { %v4435_v45 = vpop.f32.mrf.mxu1  ;;  %v3702_v46 = vpop.f32.mrf.mxu0 }
 0x320   : > { %v2329_v48 = vpop.f32.mrf.mxu0 }
 0x321   : > { %v3681_v49 = vpop.f32.mrf.mxu1 }
 0x322   : > { %2648 = vrot.lane.b32.xlu1 %v3681_v49, %s3931_s26 }
 0x323   : > { %v2104_v51 = vpop.f32.mrf.mxu1 }
 0x324   : > { %2646 = vrot.lane.b32.xlu0 %v2104_v51, %s3931_s26  ;;  %v3716_v53 = vpop.f32.mrf.mxu0 }
 0x326   : > { %2684 = vrot.lane.b32.xlu1 %v3716_v53, %s3932_s19  ;;  %v2479_v54 = vpop.f32.mrf.mxu0 }
 0x328   : > { %2682 = vrot.lane.b32.xlu0 %v2479_v54, %s3932_s19  ;;  %v3695_v55 = vpop.f32.mrf.mxu1 }
 0x32a   : > { %2656 = vrot.lane.b32.xlu1 %v3695_v55, %s3931_s26  ;;  %v2254_v23 = vpop.f32.mrf.mxu1  ;;  %v3730_v60 = vpop.f32.mrf.mxu0 }
 0x32c   : > { %2654 = vrot.lane.b32.xlu0 %v2254_v23, %s3931_s26  ;;  %v3709_v25 = vpop.f32.mrf.mxu1  ;;  %v2629_v57 = vpop.f32.mrf.mxu0 }
 0x32e   : > { %2680 = vrot.lane.b32.xlu1 %v3709_v25, %s3932_s19  ;;  %v2404_v30 = vpop.f32.mrf.mxu1 }
 0x330   : > { %2678 = vrot.lane.b32.xlu0 %v2404_v30, %s3932_s19  ;;  %v3723_v33 = vpop.f32.mrf.mxu1 }
 0x332   : > { %2660 = vrot.lane.b32.xlu1 %v3702_v46, %s3931_s26  ;;  %v2554_v59 = vpop.f32.mrf.mxu1 }
 0x334   : > { %2658 = vrot.lane.b32.xlu0 %v2329_v48, %s3931_s26  ;;  %s3253_s26 = sshll.u32 %s4039_s25, 2 }
 0x335   : > { %s458_s21 = scalar_lea.vmem [#allocation3], %s3253_s26 }
 0x336   : > { %2688 = vrot.lane.b32.xlu1 %v3723_v33, %s3932_s19  ;;  %s3169_s22 = sshll.u32 %s458_s21, 4  ;;  %s3170_s22 = int_to_ptr.vmem [resolvable:$true] %s3169_s22 }
 0x337   : > { %s3867_s13 = scalar_lea.vmem %s3170_s22, 64  ;;  %p3874_p3 = scmp.lt.s32.totalorder %s3170_s22, %s3872_s17 }
 0x338   : > { %2686 = vrot.lane.b32.xlu0 %v2554_v59, %s3932_s19  ;;  %v3933_v59 = vmov 4   ;;  %p3868_p0 = scmp.ne.s32.totalorder %s3170_s22, %s3867_s13  ;;  %p3875_p4 = scmp.lt.s32.totalorder %s3873_s18, %s3867_s13 }
 0x339   : > { %3833 = vset.pattern.permute.xlu1 %v3933_v59  ;;  %3834 = vset.pattern.permute.xlu0 %v3933_v59 }
 0x33a   : > { %2692 = vrot.lane.b32.xlu1 %v3730_v60, %s3932_s19  ;;  %v3323_v60 = vld [vmem:[%s4599_s7] ss:$0 sm:$0xff]  ;;  %p3869_p1 = pnand %p3868_p0, %p4019_p6  ;;  %p3876_p5 = por %p3875_p4, %p3874_p3 }
 0x33c   : > { %2690 = vrot.lane.b32.xlu0 %v2629_v57, %s3932_s19  ;;  %p3870_p2 = pneg %p3869_p1 }
 0x33e   : > { %p3877_p7 = pnand %p3876_p5, %p3870_p2 }
 0x383   : > { %v2653_v2 = vpop.permute.xlu1 %2652 }
 0x384   : > { %v2706_v16 = vsel %vm2702_vm3, %v4409_v35, %v2653_v2  ;;  %v3314_v35 = vld [vmem:[%s4597_s5] ss:$0 sm:$0xff] }
 0x385   : > { %v2651_v63 = vpop.permute.xlu0 %2650 }
 0x386   : > { %v2705_v19 = vsel %vm2702_vm3, %v4412_v36, %v2651_v63 }
 0x394   : > { %v2649_v1 = vpop.permute.xlu1 %2648 }
 0x395   : > { %v2704_v9 = vsel %vm2702_vm3, %v4404_v29, %v2649_v1  ;;  %v2867_v29 = vld [vmem:[%s4598_s6 + $0x18] sm:$0xff] }
 0x396   : > { %v2647_v0 = vpop.permute.xlu0 %2646  ;;  %3767 = vmatprep.subr.mxu0 %v2867_v29 }
 0x397   : > { %v2703_v4 = vsel %vm2702_vm3, %v4406_v31, %v2647_v0  ;;  %3768 = vmatpush3.msra.mxu0 %v2867_v29  ;;  %v2866_v31 = vld [vmem:[%s4598_s6 + $0x10] sm:$0xff] }
 0x398   : > { %v2685_v7 = vpop.permute.xlu1 %2684  ;;  %3769 = vmatprep.subr.mxu0 %v2866_v31 }
 0x399   : > { %v2715_v17 = vsel %vm2711_vm5, %v2706_v16, %v2685_v7  ;;  %3770 = vmatpush3.msra.mxu0 %v2866_v31 }
 0x39a   : > { %v2683_v3 = vpop.permute.xlu0 %2682  ;;  %3771 = vmatprep.subr.mxu0 %v2865_v32 }
 0x39b   : > { %v2714_v15 = vsel %vm2711_vm5, %v2705_v19, %v2683_v3  ;;  %3772 = vmatpush3.msra.mxu0 %v2865_v32 }
 0x39c   : > { %v2657_v5 = vpop.permute.xlu1 %2656  ;;  %3773 = vmatprep.subr.mxu0 %v2864_v34 }
 0x39d   : > { %v2708_v18 = vsel %vm2702_vm3, %v4417_v38, %v2657_v5  ;;  %3774 = vmatpush3.msra.mxu0 %v2864_v34 }
 0x39e   : > { %v2655_v6 = vpop.permute.xlu0 %2654 }
 0x39f   : > { %v2707_v12 = vsel %vm2702_vm3, %v4422_v40, %v2655_v6 }
 0x3a0   : > { %v2681_v8 = vpop.permute.xlu1 %2680 }
 0x3a1   : > { %v2713_v11 = vsel %vm2711_vm5, %v2704_v9, %v2681_v8 }
 0x3a2   : > { %v2679_v61 = vpop.permute.xlu0 %2678 }
 0x3a3   : > { %v2712_v10 = vsel %vm2711_vm5, %v2703_v4, %v2679_v61 }
 0x3a4   : > { %v2661_v14 = vpop.permute.xlu1 %2660  ;;  %3755 = vmatprep.mubr.msk.f32.mxu1 %vm2726_vm4, %v2712_v10 }
 0x3a5   : > { %3756 = vmatmul.mubr.msk.f32.vlgmr.msra.gmra.mxu1 %vm2726_vm4, %v2713_v11  ;;  %v2710_v24 = vsel %vm2702_vm3, %v4430_v43, %v2661_v14 }
 0x3a6   : > { %3758 = vmatprep.mubr.msk.f32.mxu1 %vm2726_vm4, %v2714_v15  ;;  %v2659_v58 = vpop.permute.xlu0 %2658 }
 0x3a7   : > { %v2709_v62 = vsel %vm2702_vm3, %v4435_v45, %v2659_v58 }
 0x3a8   : > { %v2689_v56 = vpop.permute.xlu1 %2688 }
 0x3a9   : > { %3759 = vmatmul.mubr.msk.f32.gmra.mxu1 %vm2726_vm4, %v2715_v17  ;;  %v2717_v21 = vsel %vm2711_vm5, %v2708_v18, %v2689_v56 }
 0x3aa   : > { %v2687_v20 = vpop.permute.xlu0 %2686 }
 0x3ab   : > { %v2716_v13 = vsel %vm2711_vm5, %v2707_v12, %v2687_v20 }
 0x3ac   : > { %3761 = vmatprep.mubr.msk.f32.mxu1 %vm2726_vm4, %v2716_v13  ;;  %v2693_v26 = vpop.permute.xlu1 %2692 }
 0x3ad   : > { %3762 = vmatmul.mubr.msk.f32.gmra.mxu1 %vm2726_vm4, %v2717_v21  ;;  %v2719_v28 = vsel %vm2711_vm5, %v2710_v24, %v2693_v26 }
 0x3ae   : > { %v2691_v22 = vpop.permute.xlu0 %2690 }
 0x3af   : > { %v2718_v27 = vsel %vm2711_vm5, %v2709_v62, %v2691_v22 }
 0x3b0   : > { %3764 = vmatprep.mubr.msk.f32.mxu1 %vm2726_vm4, %v2718_v27 }
 0x3b1   : > { %3765 = vmatmul.mubr.msk.f32.gmra.mxu1 %vm2726_vm4, %v2719_v28 }
 0x465   : > { %v3757_v36 = vpop.f32.mrf.mxu1 }
 0x466   : > { %v2823_v37 = vadd.f32 %v3757_v36, %v3314_v35 }
 0x467   : > { %v2817_v38 = vpop.f32.mrf.mxu1 }
 0x468   : > { %v2818_v39 = vadd.f32 %v3314_v35, %v2817_v38  ;;  %v2857_v42 = vmax.f32 %v2823_v37, 0.0 }
 0x469   : > { %v3760_v40 = vpop.f32.mrf.mxu1 }
 0x46a   : > { %v2856_v41 = vmax.f32 %v2818_v39, 0.0  ;;  %v2833_v43 = vadd.f32 %v3760_v40, %v3314_v35 }
 0x46b   : > { %v2827_v44 = vpop.f32.mrf.mxu1 }
 0x46c   : > { %v2828_v45 = vadd.f32 %v3314_v35, %v2827_v44  ;;  %3775 = vmatprep.mubr.msk.f32.mxu0 %vm2702_vm3, %v2856_v41  ;;  %v2859_v48 = vmax.f32 %v2833_v43, 0.0 }
 0x46d   : > { %v3763_v46 = vpop.f32.mrf.mxu1  ;;  %3776 = vmatmul.mubr.msk.f32.vlgmr.msra.gmra.mxu0 %vm2702_vm3, %v2857_v42 }
 0x46e   : > { %v2858_v47 = vmax.f32 %v2828_v45, 0.0  ;;  %v2843_v49 = vadd.f32 %v3763_v46, %v3314_v35 }
 0x46f   : > { %v2837_v50 = vpop.f32.mrf.mxu1 }
 0x470   : > { %v2838_v51 = vadd.f32 %v3314_v35, %v2837_v50  ;;  %3778 = vmatprep.mubr.msk.f32.mxu0 %vm2702_vm3, %v2858_v47  ;;  %v2861_v54 = vmax.f32 %v2843_v49, 0.0 }
 0x471   : > { %v3766_v52 = vpop.f32.mrf.mxu1  ;;  %3779 = vmatmul.mubr.msk.f32.gmra.mxu0 %vm2702_vm3, %v2859_v48 }
 0x472   : > { %v2860_v53 = vmax.f32 %v2838_v51, 0.0  ;;  %v2853_v55 = vadd.f32 %v3766_v52, %v3314_v35 }
 0x473   : > { %v2847_v23 = vpop.f32.mrf.mxu1 }
 0x474   : > { %v2848_v25 = vadd.f32 %v3314_v35, %v2847_v23  ;;  %3781 = vmatprep.mubr.msk.f32.mxu0 %vm2702_vm3, %v2860_v53  ;;  %v2863_v33 = vmax.f32 %v2853_v55, 0.0 }
 0x475   : > { %3782 = vmatmul.mubr.msk.f32.gmra.mxu0 %vm2702_vm3, %v2861_v54 }
 0x476   : > { %v2862_v30 = vmax.f32 %v2848_v25, 0.0 }
 0x478   : > { %3784 = vmatprep.mubr.msk.f32.mxu0 %vm2702_vm3, %v2862_v30 }
 0x479   : > { %3785 = vmatmul.mubr.msk.f32.gmra.mxu0 %vm2702_vm3, %v2863_v33 }
 0x52d   : > { %v3777_v57 = vpop.f32.mrf.mxu0 }
 0x52e   : > { %v4510_v2 = vadd.f32 %v3777_v57, %v3323_v60 }
 0x52f   : > { %v2965_v63 = vpop.f32.mrf.mxu0 }
 0x530   : > { %v3333_v1 = vmul.f32 -1.442695, %v4510_v2  ;;  %v4513_v0 = vadd.f32 %v3323_v60, %v2965_v63 }
 0x531   : > { %v3780_v7 = vpop.f32.mrf.mxu0 }
 0x532   : > { %3835 = vpow2.f32 %v3333_v1  ;;  %v3332_v3 = vmul.f32 -1.442695, %v4513_v0  ;;  %v4516_v5 = vadd.f32 %v3780_v7, %v3323_v60 }
 0x533   : > { %v2975_v6 = vpop.f32.mrf.mxu0 }
 0x534   : > { %3837 = vpow2.f32 %v3332_v3  ;;  %v3335_v8 = vmul.f32 -1.442695, %v4516_v5  ;;  %v4519_v4 = vadd.f32 %v3323_v60, %v2975_v6 }
 0x535   : > { %v3783_v61 = vpop.f32.mrf.mxu0 }
 0x536   : > { %3839 = vpow2.f32 %v3335_v8  ;;  %v3334_v9 = vmul.f32 -1.442695, %v4519_v4  ;;  %v4522_v10 = vadd.f32 %v3783_v61, %v3323_v60 }
 0x537   : > { %v2985_v19 = vpop.f32.mrf.mxu0 }
 0x538   : > { %3841 = vpow2.f32 %v3334_v9  ;;  %v3337_v11 = vmul.f32 -1.442695, %v4522_v10  ;;  %v4525_v14 = vadd.f32 %v3323_v60, %v2985_v19 }
 0x539   : > { %v3786_v15 = vpop.f32.mrf.mxu0 }
 0x53a   : > { %3843 = vpow2.f32 %v3337_v11  ;;  %v3336_v58 = vmul.f32 -1.442695, %v4525_v14  ;;  %v4528_v16 = vadd.f32 %v3786_v15, %v3323_v60 }
 0x53b   : > { %v2995_v17 = vpop.f32.mrf.mxu0 }
 0x53c   : > { %3845 = vpow2.f32 %v3336_v58  ;;  %v3339_v56 = vmul.f32 -1.442695, %v4528_v16  ;;  %v4531_v12 = vadd.f32 %v3323_v60, %v2995_v17 }
 0x53e   : > { %3847 = vpow2.f32 %v3339_v56  ;;  %v3338_v20 = vmul.f32 -1.442695, %v4531_v12 }
 0x53f   : > { %v3836_v18 = vpop.eup %3835 }
 0x540   : > { %v3029_v13 = vadd.f32 1.0, %v3836_v18  ;;  %3849 = vpow2.f32 %v3338_v20 }
 0x541   : > { %v3838_v21 = vpop.eup %3837 }
 0x542   : > { %3851 = vrcp.f32 %v3029_v13  ;;  %v3028_v26 = vadd.f32 1.0, %v3838_v21 }
 0x543   : > { %v3840_v62 = vpop.eup %3839 }
 0x544   : > { %3853 = vrcp.f32 %v3028_v26  ;;  %v3031_v22 = vadd.f32 1.0, %v3840_v62 }
 0x545   : > { %v3842_v24 = vpop.eup %3841 }
 0x546   : > { %v3030_v27 = vadd.f32 1.0, %v3842_v24  ;;  %3855 = vrcp.f32 %v3031_v22 }
 0x547   : > { %v3844_v28 = vpop.eup %3843 }
 0x548   : > { %3857 = vrcp.f32 %v3030_v27  ;;  %v3033_v29 = vadd.f32 1.0, %v3844_v28 }
 0x549   : > { %v3846_v31 = vpop.eup %3845 }
 0x54a   : > { %v3032_v32 = vadd.f32 1.0, %v3846_v31  ;;  %3859 = vrcp.f32 %v3033_v29 }
 0x54b   : > { %v3848_v34 = vpop.eup %3847 }
 0x54c   : > { %3861 = vrcp.f32 %v3032_v32  ;;  %v3035_v35 = vadd.f32 1.0, %v3848_v34 }
 0x54d   : > { %v3850_v36 = vpop.eup %3849 }
 0x54e   : > { %v3034_v37 = vadd.f32 1.0, %v3850_v36  ;;  %3863 = vrcp.f32 %v3035_v35 }
 0x54f   : > { %v3852_v38 = vpop.eup %3851 }
 0x550   : > { %3865 = vrcp.f32 %v3034_v37  ;;  %3059 = vperm.xlu1 %3833, %v3852_v38  }
 0x551   : > { %v3854_v39 = vpop.eup %3853 }
 0x552   : > { %3054 = vperm.xlu0 %3834, %v3854_v39  }
 0x553   : > { %v3856_v40 = vpop.eup %3855 }
 0x555   : > { %v3858_v41 = vpop.eup %3857 }
 0x556   : > { %3064 = vperm.xlu1 %3833, %v3858_v41   ;;  %3069 = vperm.xlu0 %3834, %v3856_v40  }
 0x557   : > { %v3860_v42 = vpop.eup %3859 }
 0x559   : > { %v3862_v43 = vpop.eup %3861 }
 0x55a   : > { %3074 = vperm.xlu1 %3833, %v3862_v43   ;;  %3079 = vperm.xlu0 %3834, %v3860_v42  }
 0x55b   : > { %v3864_v44 = vpop.eup %3863 }
 0x55d   : > { %v3866_v45 = vpop.eup %3865 }
 0x55e   : > { %3084 = vperm.xlu1 %3833, %v3866_v45   ;;  %3089 = vperm.xlu0 %3834, %v3864_v44  }
 0x5cb   : > { %v3060_v46 = vpop.permute.xlu1 %3059 }
 0x5cc   : > { %v3093_v47 = vmul.f32 %v3060_v46, %v4510_v2 }
 0x5cd   : > { %v3055_v48 = vpop.permute.xlu0 %3054 }
 0x5ce   : > { %v3092_v49 = vmul.f32 %v3055_v48, %v4513_v0  ;;  %v3102_v50 = vsel %vm3100_vm6, %v3093_v47, 0.0 }
 0x5d0   : > { %v3101_v51 = vsel %vm3100_vm6, %v3092_v49, 0.0 }
 0x5d1   : > { %v3103_v52 = vadd.f32 %v3102_v50, %v3101_v51  ;;  %v3065_v53 = vpop.permute.xlu1 %3064  ;;  %v3070_v54 = vpop.permute.xlu0 %3069 }
 0x5d2   : > { %v3094_v55 = vmul.f32 %v3065_v53, %v4519_v4  ;;  %v3095_v23 = vmul.f32 %v3070_v54, %v4516_v5 }
 0x5d3   : > { %v3104_v25 = vrot.slane %v3103_v52, 4 }
 0x5d4   : > { %v3110_v30 = vsel %vm3100_vm6, %v3094_v55, 0.0  ;;  %v3111_v33 = vsel %vm3100_vm6, %v3095_v23, 0.0 }
 0x5d5   : > { %v3105_v59 = vadd.f32 %v3104_v25, %v3103_v52  ;;  %v3112_v60 = vadd.f32 %v3111_v33, %v3110_v30  ;;  %v3075_v57 = vpop.permute.xlu1 %3074  ;;  %v3080_v2 = vpop.permute.xlu0 %3079 }
 0x5d6   : > { %v3096_v63 = vmul.f32 %v3075_v57, %v4525_v14  ;;  %v3097_v1 = vmul.f32 %v3080_v2, %v4522_v10 }
 0x5d7   : > { %v3113_v0 = vrot.slane %v3112_v60, 4  ;;  %v3106_v6 = vrot.slane %v3105_v59, 2 }
 0x5d8   : > { %v3119_v7 = vsel %vm3100_vm6, %v3096_v63, 0.0  ;;  %v3120_v3 = vsel %vm3100_vm6, %v3097_v1, 0.0 }
 0x5d9   : > { %v3114_v5 = vadd.f32 %v3113_v0, %v3112_v60  ;;  %v3121_v8 = vadd.f32 %v3120_v3, %v3119_v7  ;;  %v3085_v4 = vpop.permute.xlu1 %3084  ;;  %v3090_v61 = vpop.permute.xlu0 %3089  ;;  %v3107_v58 = vadd.f32 %v3106_v6, %v3105_v59 }
 0x5da   : > { %v3098_v9 = vmul.f32 %v3085_v4, %v4531_v12  ;;  %v3099_v19 = vmul.f32 %v3090_v61, %v4528_v16 }
 0x5db   : > { %v3115_v11 = vrot.slane %v3114_v5, 2  ;;  %v3122_v15 = vrot.slane %v3121_v8, 4  ;;  %v3108_v26 = vrot.slane %v3107_v58, 1 }
 0x5dc   : > { %v3128_v14 = vsel %vm3100_vm6, %v3098_v9, 0.0  ;;  %v3129_v10 = vsel %vm3100_vm6, %v3099_v19, 0.0 }
 0x5dd   : > { %v3116_v17 = vadd.f32 %v3115_v11, %v3114_v5  ;;  %v3123_v56 = vadd.f32 %v3122_v15, %v3121_v8  ;;  %v3130_v20 = vadd.f32 %v3129_v10, %v3128_v14  ;;  %v3109_v27 = vadd.f32 %v3108_v26, %v3107_v58 }
 0x5df   : > { %v3117_v18 = vrot.slane %v3116_v17, 1  ;;  %v3124_v13 = vrot.slane %v3123_v56, 2  ;;  %v3131_v21 = vrot.slane %v3130_v20, 4  ;;  %v3138_v35 = vmul.f32 0.0625, %v3109_v27 }
 0x5e1   : > { %v3125_v62 = vadd.f32 %v3124_v13, %v3123_v56  ;;  %v3132_v12 = vadd.f32 %v3131_v21, %v3130_v20  ;;  %v3118_v22 = vadd.f32 %v3117_v18, %v3116_v17 }
 0x5e3   : > { %v3126_v16 = vrot.slane %v3125_v62, 1  ;;  %v3133_v24 = vrot.slane %v3132_v12, 2  ;;  %v3139_v31 = vmul.f32 0.0625, %v3118_v22 }
 0x5e5   : > { %v3127_v28 = vadd.f32 %v3126_v16, %v3125_v62  ;;  %v3134_v29 = vadd.f32 %v3133_v24, %v3132_v12  ;;  %v3147_v38 = vsel %vm3146_vm7, %v3139_v31, %v3138_v35 }
 0x5e7   : > { %v3135_v32 = vrot.slane %v3134_v29, 1  ;;  %v3140_v34 = vmul.f32 0.0625, %v3127_v28 }
 0x5e9   : > { %v3136_v36 = vadd.f32 %v3135_v32, %v3134_v29  ;;  %v3149_v39 = vsel %vm3148_vm8, %v3140_v34, %v3147_v38 }
 0x5eb   : > { %v3141_v37 = vmul.f32 0.0625, %v3136_v36 }
 0x5ed   : > { %v3151_v40 = vsel %vm3150_vm9, %v3141_v37, %v3149_v39 }
 0x5ee   : > { %3154 = vst.msk [vmem:[%s458_s21] sm:$0xf] %vm3153_vm10, %v3151_v40 }
 0x5ef   : > { %3880 = shalt.err (!%p3877_p7)
}
 0x5f0   : > { %s3881_s19 = scalar_lea.hbm %s4555_s10, 64  ;;  %s3885_s20 = scalar_lea.hbm %s4600_s8, 128 }
 0x5f1   : > { %p3882_p10 = scmp.ne.s32.totalorder %s4555_s10, %s3881_s19  ;;  %p3886_p13 = scmp.lt.s32.totalorder %s4555_s10, %s4600_s8 }
 0x5f2   : > { %p3887_p0 = scmp.lt.s32.totalorder %s3885_s20, %s3881_s19 }
 0x5f3   : > { %p3883_p11 = pnand %p3882_p10, %p4019_p6 }
 0x5f4   : > { %p3888_p1 = por %p3887_p0, %p3886_p13 }
 0x5f5   : > { %p3884_p12 = pneg %p3883_p11 }
 0x5f7   : > { %p3889_p2 = pnand %p3888_p1, %p3884_p12 }
 0x5f9   : > { %3892 = shalt.err (!%p3889_p2)
}
 0x5fa   : > { %3789 = dma.vmem_to_hbm [thread:$0]  (%p4019_p6), %s3170_s22, 64, %s4555_s10, %s3156_s12  }
 0x5fb PF: > { %s3181_s24 = sand.u32 1, %s3915_s27   ;;  %p3792_p3 = pnand %p3248_p9, %p4023_p8 }
 0x5fc   : > { %s3182_s13 = scalar_lea.sflag [#allocation4], %s3181_s24 }
 0x5fd   : > { %p3793_p4 = pneg %p3792_p3 }
 0x5ff   : > { %3910 = dma.done.wait (%p3793_p4), %s3182_s13, 64  }
 0x600   : > { %3912 = vsyncadd (%p3793_p4), %s3182_s13, 4294967232  ;;  %p18_p5 = scmp.ge.s32.totalorder %s4005_s11, 4   ;;  %s4603_s27 = smov %s3919_s28 }
 0x601   : > { %s4604_s28 = smov %s3923_s29  ;;  %s4605_s29 = smov %s4017_s14 }
 0x602   : > { %s4606_s30 = smov %s4005_s11  ;;  %20 = sbr.rel (!%p18_p5) target bundleno = 3 (0x3), region = 136 }
 0x607   :  { %3187 = vsyncpa [#allocation4], 1 }
 0x608   :  { %3189 = vsyncpa [#allocation4 + $0x1], 1 }

</bundles_post_ra>
